<compile_context>
chip_gen: v7x
topology: tpu7x:2x2x1
jax: 0.10.0
libtpu: 0.0.40
codegen_flags: <defaults>
</compile_context>

<pallas_src>
import jax
import jax.numpy as jnp
from jax.experimental import pallas as pl
from jax.experimental.pallas import tpu as pltpu

_LANE = 128
_MAX_PIX_PER_STEP = 128 * 1024   # caps double-buffered x+out footprint at ~16 MiB


def _projection_kernel(x_ref, w1_ref, b1_ref, w2_ref, b2_ref, o_ref):
    # x_ref:  (Nb, Cin,   TP)   lane-dense pixel slab (TP = pixel tile)
    # w1_ref: (Cin, Cin)        conv1 weight (out, in) == torch weight[:, :, 0, 0]
    # b1_ref: (Cin, 1)
    # w2_ref: (Cproj, Cin)      conv2 weight (out, in)
    # b2_ref: (Cproj, 1)
    # o_ref:  (Nb, Cproj, TP)
    x = x_ref[...]
    w1 = w1_ref[...]
    w2 = w2_ref[...]
    b1 = b1_ref[...][None, :, :]          # (1, Cin, 1)
    b2 = b2_ref[...][None, :, :]          # (1, Cproj, 1)
    nb, cin, tp = x.shape

    # conv1 + ReLU: h[n, o, p] = relu(b1[o] + sum_i w1[o, i] * x[n, i, p])
    # Bias folded into the first MAC; unrolled over the tiny Cin axis, every
    # op lane-dense over TP (no MXU, no partial-lane vregs).
    h = w1[None, :, 0:1] * x[:, 0:1, :] + b1
    for i in range(1, cin):
        h = h + w1[None, :, i:i + 1] * x[:, i:i + 1, :]
    h = jnp.maximum(h, 0.0)

    # conv2: y[n, o, p] = b2[o] + sum_i w2[o, i] * h[n, i, p]
    y = w2[None, :, 0:1] * h[:, 0:1, :] + b2
    for i in range(1, cin):
        y = y + w2[None, :, i:i + 1] * h[:, i:i + 1, :]

    o_ref[...] = y.astype(o_ref.dtype)


def _largest_divisor_leq(n, k):
    k = max(1, min(n, k))
    while n % k:
        k -= 1
    return k


def projection_v2(x_nchw, w1, b1, w2, b2, *, tile_pix=64 * 1024):
    """Fused 1x1conv -> ReLU -> 1x1conv, NCHW in / NCHW out.

    Args:
      x_nchw: (N, Cin, H, W) float32
      w1:     (Cin, Cin)     conv1 weight as (out, in)  (torch weight[:, :, 0, 0])
      b1:     (Cin,)
      w2:     (Cproj, Cin)   conv2 weight as (out, in)
      b2:     (Cproj,)
    Returns:
      (N, Cproj, H, W) float32
    """
    N, Cin, H, W = x_nchw.shape
    Cproj = w2.shape[0]
    HW = H * W

    # NCHW is already (N, Cin, H*W) contiguously -> pure reshape, no transpose,
    # no extra HBM pass.
    x = x_nchw.reshape(N, Cin, HW)

    tile_pix = max(_LANE, min(tile_pix, _MAX_PIX_PER_STEP))
    hw128 = pl.cdiv(HW, _LANE) * _LANE

    if hw128 >= tile_pix:
        # Large feature map: one image per step, lane tile of ~tile_pix pixels.
        nb = 1
        tp = (tile_pix // _LANE) * _LANE
    else:
        # Small feature map: take the whole pixel axis and batch images per
        # step so each grid step still moves a sizeable DMA.
        tp = HW
        nb = _largest_divisor_leq(N, tile_pix // hw128)

    # v7x has two TensorCores sharing HBM: keep >= 2 grid blocks when possible.
    if (N // nb) * pl.cdiv(HW, tp) < 2:
        if nb > 1:
            nb = _largest_divisor_leq(N, N // 2)
        elif HW > _LANE:
            tp = max(_LANE, pl.cdiv(pl.cdiv(HW, 2), _LANE) * _LANE)

    # Pixel-block axis innermost (fastest varying) -> consecutive steps stream
    # contiguous HBM within an image.
    grid = (N // nb, pl.cdiv(HW, tp))

    b1_2d = b1.reshape(Cin, 1)
    b2_2d = b2.reshape(Cproj, 1)

    out = pl.pallas_call(
        _projection_kernel,
        out_shape=jax.ShapeDtypeStruct((N, Cproj, HW), x.dtype),
        grid_spec=pltpu.PrefetchScalarGridSpec(
            num_scalar_prefetch=0,
            grid=grid,
            in_specs=[
                pl.BlockSpec((nb, Cin, tp), lambda n, p: (n, 0, p)),   # x slab
                pl.BlockSpec((Cin, Cin), lambda n, p: (0, 0)),         # w1 (resident)
                pl.BlockSpec((Cin, 1), lambda n, p: (0, 0)),           # b1
                pl.BlockSpec((Cproj, Cin), lambda n, p: (0, 0)),       # w2
                pl.BlockSpec((Cproj, 1), lambda n, p: (0, 0)),         # b2
            ],
            out_specs=pl.BlockSpec((nb, Cproj, tp), lambda n, p: (n, 0, p)),
        ),
        compiler_params=pltpu.CompilerParams(
            dimension_semantics=("parallel", "parallel"),
            # Double-buffered x+out footprint is capped at ~16 MiB; 32 MiB
            # leaves ample headroom even on v7x's 64 MiB physical VMEM.
            vmem_limit_bytes=32 * 1024 * 1024,
        ),
    )(x, w1, b1_2d, w2, b2_2d)

    return out.reshape(N, Cproj, H, W)


def _reference(x_nchw, w1, b1, w2, b2):
    # Plain-JAX reference of the same math (1x1 conv == channel matmul).
    h = jnp.einsum("oc,nchw->nohw", w1, x_nchw) + b1[None, :, None, None]
    h = jnp.maximum(h, 0.0)
    return jnp.einsum("oc,nchw->nohw", w2, h) + b2[None, :, None, None]


if __name__ == "__main__":
    # Small shapes consistent with the module: N=2, base_channels=4, H=W=16, proj_dim=8
    N, C, H, W = 2, 4, 16, 16
    PROJ = 8

    key = jax.random.PRNGKey(0)
    kx, kw1, kb1, kw2, kb2 = jax.random.split(key, 5)

    x = jax.random.normal(kx, (N, C, H, W), dtype=jnp.float32)
    # Conv2d(base, base, 1) weight (out, in, 1, 1) -> stored here as (out, in)
    w1 = jax.random.normal(kw1, (C, C), dtype=jnp.float32) * 0.1
    b1 = jax.random.normal(kb1, (C,), dtype=jnp.float32) * 0.1
    # Conv2d(base, proj_dim, 1) weight -> (out, in)
    w2 = jax.random.normal(kw2, (PROJ, C), dtype=jnp.float32) * 0.1
    b2 = jax.random.normal(kb2, (PROJ,), dtype=jnp.float32) * 0.1

    y = projection_v2(x, w1, b1, w2, b2)
    jax.block_until_ready(y)

    y_ref = _reference(x, w1, b1, w2, b2)
    assert y.shape == (N, PROJ, H, W)
    assert jnp.allclose(y, y_ref, atol=1e-5, rtol=1e-5)

    print("KERNEL_OK")
</pallas_src>

<mosaic_0001>
module attributes {stable_mosaic.version = 11 : i64} {
  func.func @_projection_kernel(%arg0: i32, %arg1: i32, %arg2: memref<1x4x256xf32, #tpu.memory_space<vmem>>, %arg3: memref<4x4xf32, #tpu.memory_space<vmem>>, %arg4: memref<4x1xf32, #tpu.memory_space<vmem>>, %arg5: memref<8x4xf32, #tpu.memory_space<vmem>>, %arg6: memref<8x1xf32, #tpu.memory_space<vmem>>, %arg7: memref<1x8x256xf32, #tpu.memory_space<vmem>>) attributes {dimension_semantics = [#tpu.dimension_semantics<parallel>, #tpu.dimension_semantics<parallel>], iteration_bounds = array<i64: 2, 1>, scalar_prefetch = 0 : i64, scratch_operands = 0 : i64, tpu.core_type = #tpu.core_type<tc>, window_params = [{transform_indices = @transform_0, window_bounds = array<i64: 1, 4, 256>}, {pipeline_mode = #tpu.pipeline_mode<synchronous>, transform_indices = @transform_1, window_bounds = array<i64: 4, 4>}, {pipeline_mode = #tpu.pipeline_mode<synchronous>, transform_indices = @transform_2, window_bounds = array<i64: 4, 1>}, {pipeline_mode = #tpu.pipeline_mode<synchronous>, transform_indices = @transform_3, window_bounds = array<i64: 8, 4>}, {pipeline_mode = #tpu.pipeline_mode<synchronous>, transform_indices = @transform_4, window_bounds = array<i64: 8, 1>}, {transform_indices = @transform_5, window_bounds = array<i64: 1, 8, 256>}]} {
    %c0 = arith.constant 0 : index
    %c0_0 = arith.constant 0 : index
    %c0_1 = arith.constant 0 : index
    %0 = vector.load %arg2[%c0, %c0_0, %c0_1] : memref<1x4x256xf32, #tpu.memory_space<vmem>>, vector<1x4x256xf32>
    %c0_2 = arith.constant 0 : index
    %c0_3 = arith.constant 0 : index
    %1 = vector.load %arg3[%c0_2, %c0_3] : memref<4x4xf32, #tpu.memory_space<vmem>>, vector<4x4xf32>
    %c0_4 = arith.constant 0 : index
    %c0_5 = arith.constant 0 : index
    %2 = vector.load %arg5[%c0_4, %c0_5] : memref<8x4xf32, #tpu.memory_space<vmem>>, vector<8x4xf32>
    %c0_6 = arith.constant 0 : index
    %c0_7 = arith.constant 0 : index
    %3 = vector.load %arg4[%c0_6, %c0_7] : memref<4x1xf32, #tpu.memory_space<vmem>>, vector<4x1xf32>
    %4 = vector.shape_cast %3 : vector<4x1xf32> to vector<1x4x1xf32>
    %c0_8 = arith.constant 0 : index
    %c0_9 = arith.constant 0 : index
    %5 = vector.load %arg6[%c0_8, %c0_9] : memref<8x1xf32, #tpu.memory_space<vmem>>, vector<8x1xf32>
    %6 = vector.shape_cast %5 : vector<8x1xf32> to vector<1x8x1xf32>
    %7 = vector.extract_strided_slice %1 {offsets = [0, 0], sizes = [4, 1], strides = [1, 1]} : vector<4x4xf32> to vector<4x1xf32>
    %8 = vector.shape_cast %7 : vector<4x1xf32> to vector<1x4x1xf32>
    %9 = vector.extract_strided_slice %0 {offsets = [0, 0, 0], sizes = [1, 1, 256], strides = [1, 1, 1]} : vector<1x4x256xf32> to vector<1x1x256xf32>
    %10 = vector.broadcast %8 : vector<1x4x1xf32> to vector<1x4x256xf32>
    %11 = vector.broadcast %9 : vector<1x1x256xf32> to vector<1x4x256xf32>
    %12 = arith.mulf %10, %11 : vector<1x4x256xf32>
    %13 = vector.broadcast %4 : vector<1x4x1xf32> to vector<1x4x256xf32>
    %14 = arith.addf %12, %13 : vector<1x4x256xf32>
    %15 = vector.extract_strided_slice %1 {offsets = [0, 1], sizes = [4, 1], strides = [1, 1]} : vector<4x4xf32> to vector<4x1xf32>
    %16 = vector.shape_cast %15 : vector<4x1xf32> to vector<1x4x1xf32>
    %17 = vector.extract_strided_slice %0 {offsets = [0, 1, 0], sizes = [1, 1, 256], strides = [1, 1, 1]} : vector<1x4x256xf32> to vector<1x1x256xf32>
    %18 = vector.broadcast %16 : vector<1x4x1xf32> to vector<1x4x256xf32>
    %19 = vector.broadcast %17 : vector<1x1x256xf32> to vector<1x4x256xf32>
    %20 = arith.mulf %18, %19 : vector<1x4x256xf32>
    %21 = arith.addf %14, %20 : vector<1x4x256xf32>
    %22 = vector.extract_strided_slice %1 {offsets = [0, 2], sizes = [4, 1], strides = [1, 1]} : vector<4x4xf32> to vector<4x1xf32>
    %23 = vector.shape_cast %22 : vector<4x1xf32> to vector<1x4x1xf32>
    %24 = vector.extract_strided_slice %0 {offsets = [0, 2, 0], sizes = [1, 1, 256], strides = [1, 1, 1]} : vector<1x4x256xf32> to vector<1x1x256xf32>
    %25 = vector.broadcast %23 : vector<1x4x1xf32> to vector<1x4x256xf32>
    %26 = vector.broadcast %24 : vector<1x1x256xf32> to vector<1x4x256xf32>
    %27 = arith.mulf %25, %26 : vector<1x4x256xf32>
    %28 = arith.addf %21, %27 : vector<1x4x256xf32>
    %29 = vector.extract_strided_slice %1 {offsets = [0, 3], sizes = [4, 1], strides = [1, 1]} : vector<4x4xf32> to vector<4x1xf32>
    %30 = vector.shape_cast %29 : vector<4x1xf32> to vector<1x4x1xf32>
    %31 = vector.extract_strided_slice %0 {offsets = [0, 3, 0], sizes = [1, 1, 256], strides = [1, 1, 1]} : vector<1x4x256xf32> to vector<1x1x256xf32>
    %32 = vector.broadcast %30 : vector<1x4x1xf32> to vector<1x4x256xf32>
    %33 = vector.broadcast %31 : vector<1x1x256xf32> to vector<1x4x256xf32>
    %34 = arith.mulf %32, %33 : vector<1x4x256xf32>
    %35 = arith.addf %28, %34 : vector<1x4x256xf32>
    %cst = arith.constant 0.000000e+00 : f32
    %36 = vector.broadcast %cst : f32 to vector<1x4x256xf32>
    %37 = arith.maximumf %35, %36 : vector<1x4x256xf32>
    %38 = vector.extract_strided_slice %2 {offsets = [0, 0], sizes = [8, 1], strides = [1, 1]} : vector<8x4xf32> to vector<8x1xf32>
    %39 = vector.shape_cast %38 : vector<8x1xf32> to vector<1x8x1xf32>
    %40 = vector.extract_strided_slice %37 {offsets = [0, 0, 0], sizes = [1, 1, 256], strides = [1, 1, 1]} : vector<1x4x256xf32> to vector<1x1x256xf32>
    %41 = vector.broadcast %39 : vector<1x8x1xf32> to vector<1x8x256xf32>
    %42 = vector.broadcast %40 : vector<1x1x256xf32> to vector<1x8x256xf32>
    %43 = arith.mulf %41, %42 : vector<1x8x256xf32>
    %44 = vector.broadcast %6 : vector<1x8x1xf32> to vector<1x8x256xf32>
    %45 = arith.addf %43, %44 : vector<1x8x256xf32>
    %46 = vector.extract_strided_slice %2 {offsets = [0, 1], sizes = [8, 1], strides = [1, 1]} : vector<8x4xf32> to vector<8x1xf32>
    %47 = vector.shape_cast %46 : vector<8x1xf32> to vector<1x8x1xf32>
    %48 = vector.extract_strided_slice %37 {offsets = [0, 1, 0], sizes = [1, 1, 256], strides = [1, 1, 1]} : vector<1x4x256xf32> to vector<1x1x256xf32>
    %49 = vector.broadcast %47 : vector<1x8x1xf32> to vector<1x8x256xf32>
    %50 = vector.broadcast %48 : vector<1x1x256xf32> to vector<1x8x256xf32>
    %51 = arith.mulf %49, %50 : vector<1x8x256xf32>
    %52 = arith.addf %45, %51 : vector<1x8x256xf32>
    %53 = vector.extract_strided_slice %2 {offsets = [0, 2], sizes = [8, 1], strides = [1, 1]} : vector<8x4xf32> to vector<8x1xf32>
    %54 = vector.shape_cast %53 : vector<8x1xf32> to vector<1x8x1xf32>
    %55 = vector.extract_strided_slice %37 {offsets = [0, 2, 0], sizes = [1, 1, 256], strides = [1, 1, 1]} : vector<1x4x256xf32> to vector<1x1x256xf32>
    %56 = vector.broadcast %54 : vector<1x8x1xf32> to vector<1x8x256xf32>
    %57 = vector.broadcast %55 : vector<1x1x256xf32> to vector<1x8x256xf32>
    %58 = arith.mulf %56, %57 : vector<1x8x256xf32>
    %59 = arith.addf %52, %58 : vector<1x8x256xf32>
    %60 = vector.extract_strided_slice %2 {offsets = [0, 3], sizes = [8, 1], strides = [1, 1]} : vector<8x4xf32> to vector<8x1xf32>
    %61 = vector.shape_cast %60 : vector<8x1xf32> to vector<1x8x1xf32>
    %62 = vector.extract_strided_slice %37 {offsets = [0, 3, 0], sizes = [1, 1, 256], strides = [1, 1, 1]} : vector<1x4x256xf32> to vector<1x1x256xf32>
    %63 = vector.broadcast %61 : vector<1x8x1xf32> to vector<1x8x256xf32>
    %64 = vector.broadcast %62 : vector<1x1x256xf32> to vector<1x8x256xf32>
    %65 = arith.mulf %63, %64 : vector<1x8x256xf32>
    %66 = arith.addf %59, %65 : vector<1x8x256xf32>
    %c0_10 = arith.constant 0 : index
    %c0_11 = arith.constant 0 : index
    %c0_12 = arith.constant 0 : index
    %67 = vector.load %arg7[%c0_10, %c0_11, %c0_12] : memref<1x8x256xf32, #tpu.memory_space<vmem>>, vector<1x8x256xf32>
    tpu.vector_store %arg7[%c0_10, %c0_11, %c0_12], %66 {strides = array<i32>} : memref<1x8x256xf32, #tpu.memory_space<vmem>>, vector<1x8x256xf32>,
    return
  }
  func.func @transform_0(%arg0: i32, %arg1: i32) -> (i32, i32, i32) {
    %c0_i32 = arith.constant 0 : i32
    %c0_i32_0 = arith.constant 0 : i32
    return %arg0, %c0_i32, %arg1 : i32, i32, i32
  }
  func.func @transform_1(%arg0: i32, %arg1: i32) -> (i32, i32) {
    %c0_i32 = arith.constant 0 : i32
    %c0_i32_0 = arith.constant 0 : i32
    %c0_i32_1 = arith.constant 0 : i32
    return %c0_i32, %c0_i32_0 : i32, i32
  }
  func.func @transform_2(%arg0: i32, %arg1: i32) -> (i32, i32) {
    %c0_i32 = arith.constant 0 : i32
    %c0_i32_0 = arith.constant 0 : i32
    %c0_i32_1 = arith.constant 0 : i32
    return %c0_i32, %c0_i32_0 : i32, i32
  }
  func.func @transform_3(%arg0: i32, %arg1: i32) -> (i32, i32) {
    %c0_i32 = arith.constant 0 : i32
    %c0_i32_0 = arith.constant 0 : i32
    %c0_i32_1 = arith.constant 0 : i32
    return %c0_i32, %c0_i32_0 : i32, i32
  }
  func.func @transform_4(%arg0: i32, %arg1: i32) -> (i32, i32) {
    %c0_i32 = arith.constant 0 : i32
    %c0_i32_0 = arith.constant 0 : i32
    %c0_i32_1 = arith.constant 0 : i32
    return %c0_i32, %c0_i32_0 : i32, i32
  }
  func.func @transform_5(%arg0: i32, %arg1: i32) -> (i32, i32, i32) {
    %c0_i32 = arith.constant 0 : i32
    %c0_i32_0 = arith.constant 0 : i32
    return %arg0, %c0_i32, %arg1 : i32, i32, i32
  }
}

</mosaic_0001>

<bundles_post_ra>
// kernel: tpu_custom_call.1
= control target key start
LH: loop header
LB: loop body
LE: loop exit
PB: predicated region body
PF: predicated region fallthrough
CT: control target
= control target key end

     0   :  { %10 = vsyncpa [#allocation3], 0  ;;  %s884_s0 = inlined_call_operand.vmem [shape: f32[2,4,256], index: 0, kind: input, shape index: {}]   ;;  %s885_s1 = inlined_call_operand.vmem [shape: f32[4,4], index: 1, kind: input, shape index: {}]   ;;  %s886_s2 = inlined_call_operand.vmem [shape: f32[4,1], index: 2, kind: input, shape index: {}]   ;;  %s887_s3 = inlined_call_operand.vmem [shape: f32[8,4], index: 3, kind: input, shape index: {}]   ;;  %s888_s4 = inlined_call_operand.vmem [shape: f32[8,1], index: 4, kind: input, shape index: {}]   ;;  %s889_s5 = inlined_call_operand.hbm [shape: f32[2,8,256], index: 5, kind: output, shape index: {}]  }
   0x1   :  { %12 = vsyncpa [#allocation3 + $0x1], 0  ;;  %s735_s18 = smov 0   ;;  %s737_s19 = smov 0  }
   0x2   :  { %s739_s20 = smov 0   ;;  %s741_s21 = smov 0  }
   0x3   :  { %s743_s22 = smov 0   ;;  %s745_s23 = smov 0  }
   0x4 LB: > { %s537_s24 = sadd.s32 4294967295, %s698_s23   ;;  %s538_s25 = sadd.s32 4294967294, %s698_s23   ;;  %s698_s23 = sphi %s745_s23, %s18_s23   ;;  %s694_s22 = sphi %s743_s22, %s896_s22   ;;  %s690_s21 = sphi %s741_s21, %s895_s21   ;;  %s686_s20 = sphi %s739_s20, %s894_s20   ;;  %s682_s19 = sphi %s737_s19, %s893_s19   ;;  %s678_s18 = sphi %s735_s18, %s892_s18  }
   0x5   : > { %s30_s26 = sadd.s32 1, %s694_s22  ;;  %s151_s27 = sadd.s32 1, %s686_s20 }
   0x6   : > { %p32_p0 = scmp.ge.s32.totalorder %s30_s26, 2  ;;  %p161_p1 = scmp.ne.s32.totalorder %s686_s20, %s682_s19 }
   0x7   : > { %p162_p2 = scmp.eq.s32.totalorder %s537_s24, 1  ;;  %p167_p3 = scmp.ne.s32.totalorder %s682_s19, %s678_s18 }
   0x8   : > { %s898_s26 = smov (%p32_p0, %s30_s26), 0  ;;  %p168_p5 = scmp.eq.s32.totalorder %s538_s25, 1 }
   0x9   : > { %p775_p4 = por %p162_p2, %p161_p1  ;;  %s146_s29 = ssub.s32 %s694_s22, %s898_s26 }
   0xa   : > { %p541_p6 = scmp.ge.s32.totalorder %s698_s23, 1  ;;  %p149_p7 = scmp.eq.s32.totalorder %s146_s29, 0 }
   0xb   : > { %p782_p8 = por %p168_p5, %p167_p3  ;;  %p211_p9 = scmp.lt.s32.totalorder %s698_s23, 3 }
   0xc   : > { %s788_s6 = scalar_select %p149_p7, %s686_s20, %s151_s27  }
   0xd   : > { %p212_p10 = pnand %p541_p6, %p211_p9 }
   0xe   : > { %v255_v0 = vld [vmem:[%s885_s1] sm:$0xf] (!%p212_p10)  ;;  %v700_v1 = vmov (!%p212_p10), 1   ;;  %v701_v2 = vmov (!%p212_p10), 0   ;;  %v702_v4 = vmov (!%p212_p10), 2   ;;  %v703_v6 = vmov (!%p212_p10), 3  }
   0xf   : > { %215 = sbr.rel (%p212_p10) target bundleno = 186 (0xba), region = 40  ;;  %612 = vset.pattern.permute.xlu1 (!%p212_p10), %v700_v1  ;;  %611 = vset.pattern.permute.xlu0 (!%p212_p10), %v701_v2  ;;  %v257_v3 = vld [vmem:[%s886_s2] sm:$0xf] (!%p212_p10)  ;;  %p244_p11 = scmp.lt.s32.totalorder (!%p212_p10), %s690_s21, 1  ;;  %v265_v8 = vlaneseq (!%p212_p10) }
  0x10   : > { %293 = vperm.xlu1 (!%p212_p10), %612, %v255_v0   ;;  %261 = vperm.xlu0 (!%p212_p10), %611, %v255_v0   ;;  %v256_v5 = vld [vmem:[%s887_s3] sm:$0xff] (!%p212_p10)  ;;  %s240_s27 = sand.u32 (!%p212_p10), 1, %s682_s19   ;;  %s551_s7 = sshll.u32 (!%p212_p10), %s690_s21, 8 }
  0x11   : > { %v258_v7 = vld [vmem:[%s888_s4] sm:$0xff] (!%p212_p10)  ;;  %v266_v9 = vshrl.u32 (!%p212_p10), %v265_v8, 7  ;;  %s542_s29 = sshll.u32 (!%p212_p10), %s240_s27, 4  ;;  %s835_s12 = scalar_lea.hbm (!%p212_p10), %s889_s5, %s551_s7 }
  0x12   : > { %s242_s8 = scalar_lea.vmem (!%p212_p10), [#allocation2], %s542_s29  ;;  %s704_s14 = smov (!%p212_p10), [#allocation2]  }
  0x13   : > { %v267_v10 = vsub.s32 (!%p212_p10), 0, %v266_v9  ;;  %v271_v11 = vsub.s32 (!%p212_p10), 4, %v266_v9  ;;  %v807_v13 = vsub.s32 (!%p212_p10), 1, %v266_v9  ;;  %v302_v14 = vsub.s32 (!%p212_p10), 5, %v266_v9  ;;  %s461_s9 = sshll.u32 (!%p212_p10), %s242_s8, 4  ;;  %s837_s9 = int_to_ptr.vmem [resolvable:$true] %s461_s9 }
  0x14   : > { %613 = vset.pattern.permute.xlu1 (!%p212_p10), %v702_v4  ;;  %287 = vperm.xlu0 (!%p212_p10), %611, %v257_v3   ;;  %v809_v17 = vsub.s32 (!%p212_p10), 2, %v266_v9  ;;  %v328_v18 = vsub.s32 (!%p212_p10), 6, %v266_v9  ;;  %v813_v25 = vsub.s32 (!%p212_p10), 3, %v266_v9  ;;  %v354_v26 = vsub.s32 (!%p212_p10), 7, %v266_v9  ;;  %s620_s13 = scalar_lea.vmem (!%p212_p10), %s837_s9, 256 }
  0x15   : > { %319 = vperm.xlu1 (!%p212_p10), %613, %v255_v0   ;;  %p621_p12 = scmp.ne.s32.totalorder (!%p212_p10), %s837_s9, %s620_s13 }
  0x16   : > { %s245_s15 = scalar_select %p244_p11, %s690_s21, 1 }
  0x17   : > { %s445_s21 = scalar_lea.sflag [#allocation3], %s240_s27  ;;  %p622_p13 = pnand %p621_p12, %p775_p4 }
  0x18   : > { %614 = vset.pattern.permute.xlu0 %v703_v6  ;;  %s550_s16 = sshll.u32 %s245_s15, 3  ;;  %s624_s15 = sshll.u32 %s704_s14, 4  ;;  %s625_s15 = int_to_ptr.vmem [resolvable:$false] %s624_s15 }
  0x19   : > { %615 = vset.pattern.permute.xlu1 %v701_v2  ;;  %345 = vperm.xlu0 %614, %v255_v0   ;;  %s251_s25 = scalar_lea.vmem %s884_s0, %s550_s16  ;;  %p623_p0 = pneg %p622_p13 }
  0x1a   : > { %374 = vperm.xlu1 %615, %v256_v5   ;;  %v254_v12 = vld [vmem:[%s251_s25] sm:$0xff]  ;;  %s626_s16 = scalar_lea.vmem %s625_s15, 512  ;;  %p627_p1 = scmp.lt.s32.totalorder %s837_s9, %s625_s15 }
  0x1b   : > { %v268_v15 = vrot.slane %v254_v12, %v267_v10  ;;  %v272_v16 = vrot.slane %v254_v12, %v271_v11  ;;  %v299_v19 = vrot.slane %v254_v12, %v807_v13  ;;  %v303_v20 = vrot.slane %v254_v12, %v302_v14  ;;  %p628_p2 = scmp.lt.s32.totalorder %s626_s16, %s620_s13 }
  0x1c   : > { %v325_v23 = vrot.slane %v254_v12, %v809_v17  ;;  %v329_v24 = vrot.slane %v254_v12, %v328_v18  ;;  %v351_v35 = vrot.slane %v254_v12, %v813_v25  ;;  %v355_v36 = vrot.slane %v254_v12, %v354_v26 }
  0x1d   : > { %616 = vset.pattern.permute.xlu0 %v700_v1  ;;  %v278_v21 = vrot.slane %v268_v15, %v267_v10  ;;  %v282_v22 = vrot.slane %v272_v16, %v267_v10  ;;  %v309_v29 = vrot.slane %v299_v19, %v807_v13  ;;  %v313_v30 = vrot.slane %v303_v20, %v807_v13  ;;  %p629_p3 = por %p628_p2, %p627_p1 }
  0x1e   : > { %389 = vperm.xlu1 %615, %v258_v7   ;;  %395 = vperm.xlu0 %616, %v256_v5   ;;  %v335_v33 = vrot.slane %v325_v23, %v809_v17  ;;  %v339_v34 = vrot.slane %v329_v24, %v809_v17  ;;  %v361_v45 = vrot.slane %v351_v35, %v813_v25 }
  0x1f   : > { %v365_v46 = vrot.slane %v355_v36, %v813_v25  ;;  %p630_p5 = pnand %p629_p3, %p623_p0 }
  0x22   : > { %617 = vset.pattern.permute.xlu1 %v702_v4  ;;  %619 = vset.pattern.permute.xlu0 %v703_v6 }
  0x23   : > { %411 = vperm.xlu1 %617, %v256_v5  }
  0x27   : > { %618 = vset.pattern.permute.xlu1 %v703_v6 }
  0x28   : > { %427 = vperm.xlu1 %618, %v256_v5  }
  0x8f   : > { %v294_v27 = vpop.permute.xlu1 %293  ;;  %v262_v28 = vpop.permute.xlu0 %261 }
  0x90   : > { %v283_v31 = vmul.f32 %v278_v21, %v262_v28  ;;  %v284_v32 = vmul.f32 %v282_v22, %v262_v28  ;;  %v314_v38 = vmul.f32 %v309_v29, %v294_v27  ;;  %v315_v39 = vmul.f32 %v313_v30, %v294_v27 }
  0x93   : > { %v288_v37 = vpop.permute.xlu0 %287 }
  0x94   : > { %v290_v40 = vadd.f32 %v288_v37, %v283_v31  ;;  %v291_v41 = vadd.f32 %v288_v37, %v284_v32  ;;  %v320_v42 = vpop.permute.xlu1 %319 }
  0x95   : > { %v340_v43 = vmul.f32 %v335_v33, %v320_v42  ;;  %v341_v44 = vmul.f32 %v339_v34, %v320_v42 }
  0x96   : > { %v316_v47 = vadd.f32 %v314_v38, %v290_v40  ;;  %v317_v48 = vadd.f32 %v315_v39, %v291_v41 }
  0x98   : > { %v342_v49 = vadd.f32 %v340_v43, %v316_v47  ;;  %v343_v50 = vadd.f32 %v341_v44, %v317_v48  ;;  %v346_v51 = vpop.permute.xlu0 %345 }
  0x99   : > { %v366_v52 = vmul.f32 %v361_v45, %v346_v51  ;;  %v367_v53 = vmul.f32 %v365_v46, %v346_v51  ;;  %v375_v54 = vpop.permute.xlu1 %374 }
  0x9b   : > { %v368_v55 = vadd.f32 %v366_v52, %v342_v49  ;;  %v369_v56 = vadd.f32 %v367_v53, %v343_v50 }
  0x9d   : > { %v370_v57 = vmax.f32 %v368_v55, 0.0  ;;  %v371_v58 = vmax.f32 %v369_v56, 0.0  ;;  %v390_v59 = vpop.permute.xlu1 %389  ;;  %v396_v0 = vpop.permute.xlu0 %395 }
  0x9f   : > { %v380_v60 = vrot.slane %v370_v57, %v267_v10  ;;  %v384_v61 = vrot.slane %v371_v58, %v267_v10  ;;  %v401_v62 = vrot.slane %v370_v57, %v807_v13  ;;  %v405_v63 = vrot.slane %v371_v58, %v807_v13 }
  0xa0   : > { %v417_v4 = vrot.slane %v370_v57, %v809_v17  ;;  %v421_v5 = vrot.slane %v371_v58, %v809_v17  ;;  %v433_v13 = vrot.slane %v370_v57, %v813_v25  ;;  %v437_v15 = vrot.slane %v371_v58, %v813_v25 }
  0xa1   : > { %v385_v1 = vmul.f32 %v380_v60, %v375_v54  ;;  %v386_v2 = vmul.f32 %v384_v61, %v375_v54  ;;  %v406_v8 = vmul.f32 %v401_v62, %v396_v0  ;;  %v407_v9 = vmul.f32 %v405_v63, %v396_v0 }
  0xa2   : > { %v412_v3 = vpop.permute.xlu1 %411 }
  0xa3   : > { %v392_v6 = vadd.f32 %v390_v59, %v385_v1  ;;  %v393_v7 = vadd.f32 %v390_v59, %v386_v2  ;;  %v422_v12 = vmul.f32 %v417_v4, %v412_v3  ;;  %v423_v14 = vmul.f32 %v421_v5, %v412_v3 }
  0xa5   : > { %v408_v10 = vadd.f32 %v406_v8, %v392_v6  ;;  %v409_v11 = vadd.f32 %v407_v9, %v393_v7 }
  0xa7   : > { %v424_v16 = vadd.f32 %v422_v12, %v408_v10  ;;  %v425_v18 = vadd.f32 %v423_v14, %v409_v11  ;;  %v428_v19 = vpop.permute.xlu1 %427 }
  0xa8   : > { %v438_v17 = vmul.f32 %v433_v13, %v428_v19  ;;  %v439_v20 = vmul.f32 %v437_v15, %v428_v19 }
  0xaa   : > { %v440_v21 = vadd.f32 %v438_v17, %v424_v16  ;;  %v441_v22 = vadd.f32 %v439_v20, %v425_v18 }
  0xac   : > { %442 = vst [vmem:[%s242_s8] sm:$0xff] %v440_v21  ;;  %443 = vst [vmem:[%s242_s8 + $0x8] sm:$0xff] %v441_v22 }
  0xad   : > { %633 = shalt.err (!%p630_p5)
}
  0xae   : > { %s634_s17 = scalar_lea.hbm %s835_s12, 256  ;;  %s638_s27 = scalar_lea.hbm %s889_s5, 512 }
  0xaf   : > { %p635_p6 = scmp.ne.s32.totalorder %s835_s12, %s634_s17  ;;  %p639_p10 = scmp.lt.u32.totalorder %s835_s12, %s889_s5 }
  0xb0   : > { %p640_p11 = scmp.lt.u32.totalorder %s638_s27, %s634_s17  ;;  %p642_p13 = scmp.lt.u32.totalorder %s634_s17, %s835_s12 }
  0xb1   : > { %p636_p7 = pnand %p635_p6, %p775_p4 }
  0xb2   : > { %p641_p12 = por %p640_p11, %p639_p10 }
  0xb3   : > { %p637_p9 = pneg %p636_p7 }
  0xb4   : > { %p643_p0 = por %p642_p13, %p641_p12 }
  0xb6   : > { %p644_p1 = pnand %p643_p0, %p637_p9 }
  0xb8   : > { %647 = shalt.err (!%p644_p1)
}
  0xb9   : > { %552 = dma.vmem_to_hbm [thread:$0]  (%p775_p4), %s837_s9, 256, %s835_s12, %s445_s21  }
  0xba PF: > { %p558_p2 = scmp.ge.s32.totalorder %s698_s23, 2  ;;  %s473_s8 = sand.u32 1, %s678_s18  }
  0xbb   : > { %s474_s10 = scalar_lea.sflag [#allocation3], %s473_s8 }
  0xbc   : > { %p555_p3 = pnand %p558_p2, %p782_p8 }
  0xbe   : > { %673 = dma.done.wait (!%p555_p3), %s474_s10, 256  }
  0xbf   : > { %675 = vsyncadd (!%p555_p3), %s474_s10, 4294967040  ;;  %s18_s23 = sadd.s32 1, %s698_s23   ;;  %s892_s18 = smov %s682_s19 }
  0xc0   : > { %p15_p5 = scmp.ge.s32.totalorder %s18_s23, 4   ;;  %s893_s19 = smov %s686_s20 }
  0xc1   : > { %s894_s20 = smov %s788_s6  ;;  %s895_s21 = smov %s694_s22 }
  0xc2   : > { %s896_s22 = smov %s898_s26  ;;  %17 = sbr.rel (!%p15_p5) target bundleno = 4 (0x4), region = 75 }
  0xc9   :  { %479 = vsyncpa [#allocation3], 1 }
  0xca   :  { %481 = vsyncpa [#allocation3 + $0x1], 1 }

</bundles_post_ra>
